<compile_context>
chip_gen: v7x
topology: tpu7x:2x2x1
jax: 0.10.0
libtpu: 0.0.40
codegen_flags: <defaults>
</compile_context>

<pallas_src>
import functools
import math

import jax
import jax.numpy as jnp
from jax.experimental import pallas as pl
from jax.experimental.pallas import tpu as pltpu


# ---------------- fused CL-head kernel ----------------
def _cl_head_kernel(x2_ref, x3_ref,
                    w1a_ref, b1a_ref, w2a_ref, b2a_ref,
                    w1b_ref, b1b_ref, w2b_ref, b2b_ref,
                    out_ref, *, inv_tau, nb, eps=1e-12):
    """Fused GraphormerCLandProtoHead forward.

      x2_ref / x3_ref : (B, H)  f32  pooled 2D / 3D representations
      w1*, b1*        : (H, H), (1, H)   first Linear of each projection MLP
      w2*, b2*        : (H, P), (1, P)   second Linear of each projection MLP
      out_ref         : (1, 128) f32     lane 0 = CL_loss, lane 1 = CL_acc
    """
    f32 = jnp.float32

    def project(x, w1, b1, w2, b2):
        # Linear -> Tanh -> Linear   (two single MXU calls, EUP tanh)
        h = jnp.tanh(jnp.dot(x, w1, preferred_element_type=f32) + b1)
        z = jnp.dot(h, w2, preferred_element_type=f32) + b2
        # F.normalize(dim=-1): z / max(||z||, eps)
        ss = jnp.sum(z * z, axis=-1, keepdims=True)
        inv = 1.0 / jnp.maximum(jnp.sqrt(ss), eps)
        return z * inv

    z2 = project(x2_ref[...], w1a_ref[...], b1a_ref[...],
                 w2a_ref[...], b2a_ref[...])
    z3 = project(x3_ref[...], w1b_ref[...], b1b_ref[...],
                 w2b_ref[...], b2b_ref[...])

    # logits[i, j] = <z2_i, z3_j> / tau  -- one MXU call, no explicit transpose
    logits = jax.lax.dot_general(
        z2, z3, (((1,), (1,)), ((), ())),
        preferred_element_type=f32) * inv_tau                       # (B, B)

    B = nb
    row = jax.lax.broadcasted_iota(jnp.int32, (B, B), 0)
    col = jax.lax.broadcasted_iota(jnp.int32, (B, B), 1)
    diag_mask = row == col
    diag_r = jnp.sum(jnp.where(diag_mask, logits, 0.0),
                     axis=1, keepdims=True)                         # (B, 1)
    diag_c = jnp.sum(jnp.where(diag_mask, logits, 0.0),
                     axis=0, keepdims=True)                         # (1, B)

    # do_CL(2d, 3d): softmax cross-entropy over rows, labels = arange(B)
    m_r = jnp.max(logits, axis=1, keepdims=True)
    lse_r = m_r + jnp.log(jnp.sum(jnp.exp(logits - m_r),
                                  axis=1, keepdims=True))
    loss_1 = jnp.sum(lse_r - diag_r, keepdims=True)                 # (1, 1)
    acc_1 = jnp.sum((diag_r >= m_r).astype(f32), keepdims=True) / B

    # do_CL(3d, 2d): logits' = logits.T -> cross-entropy over columns
    m_c = jnp.max(logits, axis=0, keepdims=True)
    lse_c = m_c + jnp.log(jnp.sum(jnp.exp(logits - m_c),
                                  axis=0, keepdims=True))
    loss_2 = jnp.sum(lse_c - diag_c, keepdims=True)                 # (1, 1)
    acc_2 = jnp.sum((diag_c >= m_c).astype(f32), keepdims=True) / B

    cl_loss = 0.5 * (loss_1 + loss_2)                               # (1, 1)
    cl_acc = 0.5 * (acc_1 + acc_2)                                  # (1, 1)

    # single lane-dense unmasked store: lane 0 = loss, lane 1 = acc
    lane = jax.lax.broadcasted_iota(jnp.int32, out_ref.shape, 1)
    out_ref[...] = jnp.where(lane == 0, cl_loss,
                             jnp.where(lane == 1, cl_acc, 0.0))


def graphormer_cl_proto_head(params, pooled_output_2d, pooled_output_3d, *,
                             tau=0.1):
    """Default forward of GraphormerCLandProtoHead -> (CL_loss, CL_acc)."""
    B, H = pooled_output_2d.shape
    P = params['p2d_w2'].shape[1]

    kernel = functools.partial(_cl_head_kernel,
                               inv_tau=float(1.0 / tau), nb=B)
    out = pl.pallas_call(
        kernel,
        out_shape=jax.ShapeDtypeStruct((1, 128), jnp.float32),
        grid=(1,),
        in_specs=[
            pl.BlockSpec((B, H), lambda i: (0, 0)),
            pl.BlockSpec((B, H), lambda i: (0, 0)),
            pl.BlockSpec((H, H), lambda i: (0, 0)),
            pl.BlockSpec((1, H), lambda i: (0, 0)),
            pl.BlockSpec((H, P), lambda i: (0, 0)),
            pl.BlockSpec((1, P), lambda i: (0, 0)),
            pl.BlockSpec((H, H), lambda i: (0, 0)),
            pl.BlockSpec((1, H), lambda i: (0, 0)),
            pl.BlockSpec((H, P), lambda i: (0, 0)),
            pl.BlockSpec((1, P), lambda i: (0, 0)),
        ],
        out_specs=pl.BlockSpec((1, 128), lambda i: (0, 0)),
        compiler_params=pltpu.CompilerParams(
            dimension_semantics=("arbitrary",)),
    )(pooled_output_2d, pooled_output_3d,
      params['p2d_w1'], params['p2d_b1'].reshape(1, H),
      params['p2d_w2'], params['p2d_b2'].reshape(1, P),
      params['p3d_w1'], params['p3d_b1'].reshape(1, H),
      params['p3d_w2'], params['p3d_b2'].reshape(1, P))

    return out[0, 0], out[0, 1]


# ---------------- plain-JAX reference (mirrors the PyTorch forward) ----------
def reference_forward(params, pooled_2d, pooled_3d, *, tau=0.1):
    def mlp(x, pre):
        h = jnp.tanh(x @ params[f'{pre}_w1'] + params[f'{pre}_b1'])
        return h @ params[f'{pre}_w2'] + params[f'{pre}_b2']

    def l2norm(z):
        n = jnp.sqrt(jnp.sum(z * z, axis=-1, keepdims=True))
        return z / jnp.maximum(n, 1e-12)

    z2 = l2norm(mlp(pooled_2d, 'p2d'))
    z3 = l2norm(mlp(pooled_3d, 'p3d'))

    def do_CL(X, Y):
        B = X.shape[0]
        logits = (X @ Y.T) / tau
        labels = jnp.arange(B)
        lse = jax.scipy.special.logsumexp(logits, axis=1)
        loss = jnp.sum(lse - logits[labels, labels])       # CE, reduction='sum'
        acc = jnp.mean((jnp.argmax(logits, axis=1) == labels)
                       .astype(jnp.float32))
        return loss, acc

    l1, a1 = do_CL(z2, z3)
    l2_, a2 = do_CL(z3, z2)
    return (l1 + l2_) / 2.0, (a1 + a2) / 2.0


# ---------------- parameter init (PyTorch nn.Linear default) -----------------
def init_params(key, hidden, proj_dim):
    ks = jax.random.split(key, 8)

    def linear(kw, kb, fan_in, fan_out):
        bound = 1.0 / math.sqrt(fan_in)
        w = jax.random.uniform(kw, (fan_in, fan_out), jnp.float32,
                               -bound, bound)
        b = jax.random.uniform(kb, (fan_out,), jnp.float32, -bound, bound)
        return w, b

    p = {}
    p['p2d_w1'], p['p2d_b1'] = linear(ks[0], ks[1], hidden, hidden)
    p['p2d_w2'], p['p2d_b2'] = linear(ks[2], ks[3], hidden, proj_dim)
    p['p3d_w1'], p['p3d_b1'] = linear(ks[4], ks[5], hidden, hidden)
    p['p3d_w2'], p['p3d_b2'] = linear(ks[6], ks[7], hidden, proj_dim)
    return p


if __name__ == "__main__":
    key = jax.random.PRNGKey(0)
    pkey, dkey = jax.random.split(key)

    B, HIDDEN, PROJ_DIM = 8, 128, 64      # batch / config.hidden_size / projection_dim
    TAU = 0.1

    params = init_params(pkey, HIDDEN, PROJ_DIM)
    k2d, k3d = jax.random.split(dkey)
    pooled_output_2d = jax.random.normal(k2d, (B, HIDDEN), jnp.float32)
    pooled_output_3d = jax.random.normal(k3d, (B, HIDDEN), jnp.float32)

    cl_loss, cl_acc = graphormer_cl_proto_head(
        params, pooled_output_2d, pooled_output_3d, tau=TAU)
    cl_loss = jax.block_until_ready(cl_loss)
    cl_acc = jax.block_until_ready(cl_acc)

    ref_loss, ref_acc = reference_forward(
        params, pooled_output_2d, pooled_output_3d, tau=TAU)

    assert jnp.allclose(cl_loss, ref_loss, rtol=1e-4, atol=1e-3), \
        (float(cl_loss), float(ref_loss))
    assert jnp.allclose(cl_acc, ref_acc, atol=1e-6), \
        (float(cl_acc), float(ref_acc))
    print("KERNEL_OK")
</pallas_src>

<mosaic_0001>
module attributes {stable_mosaic.version = 11 : i64} {
  func.func @_cl_head_kernel(%arg0: i32, %arg1: memref<8x128xf32, #tpu.memory_space<vmem>>, %arg2: memref<8x128xf32, #tpu.memory_space<vmem>>, %arg3: memref<128x128xf32, #tpu.memory_space<vmem>>, %arg4: memref<1x128xf32, #tpu.memory_space<vmem>>, %arg5: memref<128x64xf32, #tpu.memory_space<vmem>>, %arg6: memref<1x64xf32, #tpu.memory_space<vmem>>, %arg7: memref<128x128xf32, #tpu.memory_space<vmem>>, %arg8: memref<1x128xf32, #tpu.memory_space<vmem>>, %arg9: memref<128x64xf32, #tpu.memory_space<vmem>>, %arg10: memref<1x64xf32, #tpu.memory_space<vmem>>, %arg11: memref<1x128xf32, #tpu.memory_space<vmem>>) attributes {dimension_semantics = [#tpu.dimension_semantics<arbitrary>], iteration_bounds = array<i64: 1>, scalar_prefetch = 0 : i64, scratch_operands = 0 : i64, tpu.core_type = #tpu.core_type<tc>, window_params = [{pipeline_mode = #tpu.pipeline_mode<synchronous>, transform_indices = @transform_0, window_bounds = array<i64: 8, 128>}, {pipeline_mode = #tpu.pipeline_mode<synchronous>, transform_indices = @transform_1, window_bounds = array<i64: 8, 128>}, {pipeline_mode = #tpu.pipeline_mode<synchronous>, transform_indices = @transform_2, window_bounds = array<i64: 128, 128>}, {pipeline_mode = #tpu.pipeline_mode<synchronous>, transform_indices = @transform_3, window_bounds = array<i64: 1, 128>}, {pipeline_mode = #tpu.pipeline_mode<synchronous>, transform_indices = @transform_4, window_bounds = array<i64: 128, 64>}, {pipeline_mode = #tpu.pipeline_mode<synchronous>, transform_indices = @transform_5, window_bounds = array<i64: 1, 64>}, {pipeline_mode = #tpu.pipeline_mode<synchronous>, transform_indices = @transform_6, window_bounds = array<i64: 128, 128>}, {pipeline_mode = #tpu.pipeline_mode<synchronous>, transform_indices = @transform_7, window_bounds = array<i64: 1, 128>}, {pipeline_mode = #tpu.pipeline_mode<synchronous>, transform_indices = @transform_8, window_bounds = array<i64: 128, 64>}, {pipeline_mode = #tpu.pipeline_mode<synchronous>, transform_indices = @transform_9, window_bounds = array<i64: 1, 64>}, {pipeline_mode = #tpu.pipeline_mode<synchronous>, transform_indices = @transform_10, window_bounds = array<i64: 1, 128>}]} {
    %c0 = arith.constant 0 : index
    %c0_0 = arith.constant 0 : index
    %0 = vector.load %arg1[%c0, %c0_0] : memref<8x128xf32, #tpu.memory_space<vmem>>, vector<8x128xf32>
    %c0_1 = arith.constant 0 : index
    %c0_2 = arith.constant 0 : index
    %1 = vector.load %arg3[%c0_1, %c0_2] : memref<128x128xf32, #tpu.memory_space<vmem>>, vector<128x128xf32>
    %c0_3 = arith.constant 0 : index
    %c0_4 = arith.constant 0 : index
    %2 = vector.load %arg4[%c0_3, %c0_4] : memref<1x128xf32, #tpu.memory_space<vmem>>, vector<1x128xf32>
    %c0_5 = arith.constant 0 : index
    %c0_6 = arith.constant 0 : index
    %3 = vector.load %arg5[%c0_5, %c0_6] : memref<128x64xf32, #tpu.memory_space<vmem>>, vector<128x64xf32>
    %c0_7 = arith.constant 0 : index
    %c0_8 = arith.constant 0 : index
    %4 = vector.load %arg6[%c0_7, %c0_8] : memref<1x64xf32, #tpu.memory_space<vmem>>, vector<1x64xf32>
    %cst = arith.constant dense<0.000000e+00> : vector<8x128xf32>
    %5 = tpu.matmul %0, %1, %cst {dimension_numbers = #tpu.dot_dimension_numbers<[1], [0], [0], [1], [0, 0, 1, 1], [], []>} : vector<8x128xf32>, vector<128x128xf32>, vector<8x128xf32> -> vector<8x128xf32>
    %6 = vector.broadcast %2 : vector<1x128xf32> to vector<8x128xf32>
    %7 = arith.addf %5, %6 : vector<8x128xf32>
    %8 = math.tanh %7 : vector<8x128xf32>
    %cst_9 = arith.constant dense<0.000000e+00> : vector<8x64xf32>
    %9 = tpu.matmul %8, %3, %cst_9 {dimension_numbers = #tpu.dot_dimension_numbers<[1], [0], [0], [1], [0, 0, 1, 1], [], []>} : vector<8x128xf32>, vector<128x64xf32>, vector<8x64xf32> -> vector<8x64xf32>
    %10 = vector.broadcast %4 : vector<1x64xf32> to vector<8x64xf32>
    %11 = arith.addf %9, %10 : vector<8x64xf32>
    %12 = arith.mulf %11, %11 : vector<8x64xf32>
    %cst_10 = arith.constant dense<0.000000e+00> : vector<8xf32>
    %13 = vector.multi_reduction <add>, %12, %cst_10 [1] : vector<8x64xf32> to vector<8xf32>
    %14 = vector.shape_cast %13 : vector<8xf32> to vector<8x1xf32>
    %15 = math.sqrt %14 : vector<8x1xf32>
    %cst_11 = arith.constant 9.99999996E-13 : f32
    %16 = vector.broadcast %cst_11 : f32 to vector<8x1xf32>
    %17 = arith.maximumf %15, %16 : vector<8x1xf32>
    %cst_12 = arith.constant 1.000000e+00 : f32
    %18 = vector.broadcast %cst_12 : f32 to vector<8x1xf32>
    %19 = arith.divf %18, %17 : vector<8x1xf32>
    %20 = vector.broadcast %19 : vector<8x1xf32> to vector<8x64xf32>
    %21 = arith.mulf %11, %20 : vector<8x64xf32>
    %c0_13 = arith.constant 0 : index
    %c0_14 = arith.constant 0 : index
    %22 = vector.load %arg2[%c0_13, %c0_14] : memref<8x128xf32, #tpu.memory_space<vmem>>, vector<8x128xf32>
    %c0_15 = arith.constant 0 : index
    %c0_16 = arith.constant 0 : index
    %23 = vector.load %arg7[%c0_15, %c0_16] : memref<128x128xf32, #tpu.memory_space<vmem>>, vector<128x128xf32>
    %c0_17 = arith.constant 0 : index
    %c0_18 = arith.constant 0 : index
    %24 = vector.load %arg8[%c0_17, %c0_18] : memref<1x128xf32, #tpu.memory_space<vmem>>, vector<1x128xf32>
    %c0_19 = arith.constant 0 : index
    %c0_20 = arith.constant 0 : index
    %25 = vector.load %arg9[%c0_19, %c0_20] : memref<128x64xf32, #tpu.memory_space<vmem>>, vector<128x64xf32>
    %c0_21 = arith.constant 0 : index
    %c0_22 = arith.constant 0 : index
    %26 = vector.load %arg10[%c0_21, %c0_22] : memref<1x64xf32, #tpu.memory_space<vmem>>, vector<1x64xf32>
    %cst_23 = arith.constant dense<0.000000e+00> : vector<8x128xf32>
    %27 = tpu.matmul %22, %23, %cst_23 {dimension_numbers = #tpu.dot_dimension_numbers<[1], [0], [0], [1], [0, 0, 1, 1], [], []>} : vector<8x128xf32>, vector<128x128xf32>, vector<8x128xf32> -> vector<8x128xf32>
    %28 = vector.broadcast %24 : vector<1x128xf32> to vector<8x128xf32>
    %29 = arith.addf %27, %28 : vector<8x128xf32>
    %30 = math.tanh %29 : vector<8x128xf32>
    %cst_24 = arith.constant dense<0.000000e+00> : vector<8x64xf32>
    %31 = tpu.matmul %30, %25, %cst_24 {dimension_numbers = #tpu.dot_dimension_numbers<[1], [0], [0], [1], [0, 0, 1, 1], [], []>} : vector<8x128xf32>, vector<128x64xf32>, vector<8x64xf32> -> vector<8x64xf32>
    %32 = vector.broadcast %26 : vector<1x64xf32> to vector<8x64xf32>
    %33 = arith.addf %31, %32 : vector<8x64xf32>
    %34 = arith.mulf %33, %33 : vector<8x64xf32>
    %cst_25 = arith.constant dense<0.000000e+00> : vector<8xf32>
    %35 = vector.multi_reduction <add>, %34, %cst_25 [1] : vector<8x64xf32> to vector<8xf32>
    %36 = vector.shape_cast %35 : vector<8xf32> to vector<8x1xf32>
    %37 = math.sqrt %36 : vector<8x1xf32>
    %cst_26 = arith.constant 9.99999996E-13 : f32
    %38 = vector.broadcast %cst_26 : f32 to vector<8x1xf32>
    %39 = arith.maximumf %37, %38 : vector<8x1xf32>
    %cst_27 = arith.constant 1.000000e+00 : f32
    %40 = vector.broadcast %cst_27 : f32 to vector<8x1xf32>
    %41 = arith.divf %40, %39 : vector<8x1xf32>
    %42 = vector.broadcast %41 : vector<8x1xf32> to vector<8x64xf32>
    %43 = arith.mulf %33, %42 : vector<8x64xf32>
    %cst_28 = arith.constant dense<0.000000e+00> : vector<8x8xf32>
    %44 = tpu.matmul %21, %43, %cst_28 {dimension_numbers = #tpu.dot_dimension_numbers<[1], [1], [0], [0], [0, 0, 1, 0], [], []>} : vector<8x64xf32>, vector<8x64xf32>, vector<8x8xf32> -> vector<8x8xf32>
    %cst_29 = arith.constant 1.000000e+01 : f32
    %45 = vector.broadcast %cst_29 : f32 to vector<8x8xf32>
    %46 = arith.mulf %44, %45 : vector<8x8xf32>
    %47 = tpu.iota {dimensions = array<i32: 0>} : vector<8x8xi32>
    %48 = tpu.iota {dimensions = array<i32: 1>} : vector<8x8xi32>
    %49 = arith.cmpi eq, %47, %48 : vector<8x8xi32>
    %cst_30 = arith.constant 0.000000e+00 : f32
    %50 = vector.broadcast %cst_30 : f32 to vector<8x8xf32>
    %51 = arith.select %49, %46, %50 : vector<8x8xi1>, vector<8x8xf32>
    %cst_31 = arith.constant dense<0.000000e+00> : vector<8xf32>
    %52 = vector.multi_reduction <add>, %51, %cst_31 [1] : vector<8x8xf32> to vector<8xf32>
    %53 = vector.shape_cast %52 : vector<8xf32> to vector<8x1xf32>
    %cst_32 = arith.constant 0.000000e+00 : f32
    %54 = vector.broadcast %cst_32 : f32 to vector<8x8xf32>
    %55 = arith.select %49, %46, %54 : vector<8x8xi1>, vector<8x8xf32>
    %cst_33 = arith.constant dense<0.000000e+00> : vector<8xf32>
    %56 = vector.multi_reduction <add>, %55, %cst_33 [0] : vector<8x8xf32> to vector<8xf32>
    %57 = vector.shape_cast %56 : vector<8xf32> to vector<1x8xf32>
    %cst_34 = arith.constant dense<0xFF800000> : vector<8xf32>
    %58 = vector.multi_reduction <maximumf>, %46, %cst_34 [1] : vector<8x8xf32> to vector<8xf32>
    %59 = vector.shape_cast %58 : vector<8xf32> to vector<8x1xf32>
    %60 = vector.broadcast %59 : vector<8x1xf32> to vector<8x8xf32>
    %61 = arith.subf %46, %60 : vector<8x8xf32>
    %62 = math.exp %61 : vector<8x8xf32>
    %cst_35 = arith.constant dense<0.000000e+00> : vector<8xf32>
    %63 = vector.multi_reduction <add>, %62, %cst_35 [1] : vector<8x8xf32> to vector<8xf32>
    %64 = vector.shape_cast %63 : vector<8xf32> to vector<8x1xf32>
    %65 = math.log %64 : vector<8x1xf32>
    %66 = arith.addf %59, %65 : vector<8x1xf32>
    %67 = arith.subf %66, %53 : vector<8x1xf32>
    %68 = vector.shape_cast %67 : vector<8x1xf32> to vector<1x8x1xf32>
    %cst_36 = arith.constant dense<0.000000e+00> : vector<1xf32>
    %69 = vector.multi_reduction <add>, %68, %cst_36 [1, 2] : vector<1x8x1xf32> to vector<1xf32>
    %70 = vector.shape_cast %69 : vector<1xf32> to vector<1x1x1xf32>
    %71 = vector.extract %70[0, 0, 0] : f32 from vector<1x1x1xf32>
    %72 = vector.broadcast %71 : f32 to vector<1x1xf32>
    %73 = arith.cmpf oge, %53, %59 : vector<8x1xf32>
    %74 = arith.extui %73 : vector<8x1xi1> to vector<8x1xi32>
    %75 = arith.sitofp %74 : vector<8x1xi32> to vector<8x1xf32>
    %76 = vector.shape_cast %75 : vector<8x1xf32> to vector<1x8x1xf32>
    %cst_37 = arith.constant dense<0.000000e+00> : vector<1xf32>
    %77 = vector.multi_reduction <add>, %76, %cst_37 [1, 2] : vector<1x8x1xf32> to vector<1xf32>
    %78 = vector.shape_cast %77 : vector<1xf32> to vector<1x1x1xf32>
    %79 = vector.extract %78[0, 0, 0] : f32 from vector<1x1x1xf32>
    %80 = vector.broadcast %79 : f32 to vector<1x1xf32>
    %cst_38 = arith.constant 8.000000e+00 : f32
    %81 = vector.broadcast %cst_38 : f32 to vector<1x1xf32>
    %82 = arith.divf %80, %81 : vector<1x1xf32>
    %cst_39 = arith.constant dense<0xFF800000> : vector<8xf32>
    %83 = vector.multi_reduction <maximumf>, %46, %cst_39 [0] : vector<8x8xf32> to vector<8xf32>
    %84 = vector.shape_cast %83 : vector<8xf32> to vector<1x8xf32>
    %85 = vector.broadcast %84 : vector<1x8xf32> to vector<8x8xf32>
    %86 = arith.subf %46, %85 : vector<8x8xf32>
    %87 = math.exp %86 : vector<8x8xf32>
    %cst_40 = arith.constant dense<0.000000e+00> : vector<8xf32>
    %88 = vector.multi_reduction <add>, %87, %cst_40 [0] : vector<8x8xf32> to vector<8xf32>
    %89 = vector.shape_cast %88 : vector<8xf32> to vector<1x8xf32>
    %90 = math.log %89 : vector<1x8xf32>
    %91 = arith.addf %84, %90 : vector<1x8xf32>
    %92 = arith.subf %91, %57 : vector<1x8xf32>
    %93 = vector.shape_cast %92 : vector<1x8xf32> to vector<1x1x8xf32>
    %cst_41 = arith.constant dense<0.000000e+00> : vector<1xf32>
    %94 = vector.multi_reduction <add>, %93, %cst_41 [1, 2] : vector<1x1x8xf32> to vector<1xf32>
    %95 = vector.shape_cast %94 : vector<1xf32> to vector<1x1x1xf32>
    %96 = vector.extract %95[0, 0, 0] : f32 from vector<1x1x1xf32>
    %97 = vector.broadcast %96 : f32 to vector<1x1xf32>
    %98 = arith.cmpf oge, %57, %84 : vector<1x8xf32>
    %99 = arith.extui %98 : vector<1x8xi1> to vector<1x8xi32>
    %100 = arith.sitofp %99 : vector<1x8xi32> to vector<1x8xf32>
    %101 = vector.shape_cast %100 : vector<1x8xf32> to vector<1x1x8xf32>
    %cst_42 = arith.constant dense<0.000000e+00> : vector<1xf32>
    %102 = vector.multi_reduction <add>, %101, %cst_42 [1, 2] : vector<1x1x8xf32> to vector<1xf32>
    %103 = vector.shape_cast %102 : vector<1xf32> to vector<1x1x1xf32>
    %104 = vector.extract %103[0, 0, 0] : f32 from vector<1x1x1xf32>
    %105 = vector.broadcast %104 : f32 to vector<1x1xf32>
    %cst_43 = arith.constant 8.000000e+00 : f32
    %106 = vector.broadcast %cst_43 : f32 to vector<1x1xf32>
    %107 = arith.divf %105, %106 : vector<1x1xf32>
    %108 = arith.addf %72, %97 : vector<1x1xf32>
    %cst_44 = arith.constant 5.000000e-01 : f32
    %109 = vector.broadcast %cst_44 : f32 to vector<1x1xf32>
    %110 = arith.mulf %109, %108 : vector<1x1xf32>
    %111 = arith.addf %82, %107 : vector<1x1xf32>
    %cst_45 = arith.constant 5.000000e-01 : f32
    %112 = vector.broadcast %cst_45 : f32 to vector<1x1xf32>
    %113 = arith.mulf %112, %111 : vector<1x1xf32>
    %114 = tpu.iota {dimensions = array<i32: 1>} : vector<1x128xi32>
    %c0_i32 = arith.constant 0 : i32
    %115 = vector.broadcast %c0_i32 : i32 to vector<1x128xi32>
    %116 = arith.cmpi eq, %114, %115 : vector<1x128xi32>
    %c1_i32 = arith.constant 1 : i32
    %117 = vector.broadcast %c1_i32 : i32 to vector<1x128xi32>
    %118 = arith.cmpi eq, %114, %117 : vector<1x128xi32>
    %cst_46 = arith.constant 0.000000e+00 : f32
    %119 = vector.shape_cast %113 : vector<1x1xf32> to vector<1x1xf32>
    %120 = vector.broadcast %119 : vector<1x1xf32> to vector<1x128xf32>
    %121 = vector.broadcast %cst_46 : f32 to vector<1x128xf32>
    %122 = arith.select %118, %120, %121 : vector<1x128xi1>, vector<1x128xf32>
    %123 = vector.shape_cast %110 : vector<1x1xf32> to vector<1x1xf32>
    %124 = vector.broadcast %123 : vector<1x1xf32> to vector<1x128xf32>
    %125 = arith.select %116, %124, %122 : vector<1x128xi1>, vector<1x128xf32>
    %c0_47 = arith.constant 0 : index
    %c0_48 = arith.constant 0 : index
    %126 = vector.load %arg11[%c0_47, %c0_48] : memref<1x128xf32, #tpu.memory_space<vmem>>, vector<1x128xf32>
    tpu.vector_store %arg11[%c0_47, %c0_48], %125 {strides = array<i32>} : memref<1x128xf32, #tpu.memory_space<vmem>>, vector<1x128xf32>,
    return
  }
  func.func @transform_0(%arg0: i32) -> (i32, i32) {
    %c0_i32 = arith.constant 0 : i32
    %c0_i32_0 = arith.constant 0 : i32
    %c0_i32_1 = arith.constant 0 : i32
    return %c0_i32, %c0_i32_0 : i32, i32
  }
  func.func @transform_1(%arg0: i32) -> (i32, i32) {
    %c0_i32 = arith.constant 0 : i32
    %c0_i32_0 = arith.constant 0 : i32
    %c0_i32_1 = arith.constant 0 : i32
    return %c0_i32, %c0_i32_0 : i32, i32
  }
  func.func @transform_2(%arg0: i32) -> (i32, i32) {
    %c0_i32 = arith.constant 0 : i32
    %c0_i32_0 = arith.constant 0 : i32
    %c0_i32_1 = arith.constant 0 : i32
    return %c0_i32, %c0_i32_0 : i32, i32
  }
  func.func @transform_3(%arg0: i32) -> (i32, i32) {
    %c0_i32 = arith.constant 0 : i32
    %c0_i32_0 = arith.constant 0 : i32
    %c0_i32_1 = arith.constant 0 : i32
    return %c0_i32, %c0_i32_0 : i32, i32
  }
  func.func @transform_4(%arg0: i32) -> (i32, i32) {
    %c0_i32 = arith.constant 0 : i32
    %c0_i32_0 = arith.constant 0 : i32
    %c0_i32_1 = arith.constant 0 : i32
    return %c0_i32, %c0_i32_0 : i32, i32
  }
  func.func @transform_5(%arg0: i32) -> (i32, i32) {
    %c0_i32 = arith.constant 0 : i32
    %c0_i32_0 = arith.constant 0 : i32
    %c0_i32_1 = arith.constant 0 : i32
    return %c0_i32, %c0_i32_0 : i32, i32
  }
  func.func @transform_6(%arg0: i32) -> (i32, i32) {
    %c0_i32 = arith.constant 0 : i32
    %c0_i32_0 = arith.constant 0 : i32
    %c0_i32_1 = arith.constant 0 : i32
    return %c0_i32, %c0_i32_0 : i32, i32
  }
  func.func @transform_7(%arg0: i32) -> (i32, i32) {
    %c0_i32 = arith.constant 0 : i32
    %c0_i32_0 = arith.constant 0 : i32
    %c0_i32_1 = arith.constant 0 : i32
    return %c0_i32, %c0_i32_0 : i32, i32
  }
  func.func @transform_8(%arg0: i32) -> (i32, i32) {
    %c0_i32 = arith.constant 0 : i32
    %c0_i32_0 = arith.constant 0 : i32
    %c0_i32_1 = arith.constant 0 : i32
    return %c0_i32, %c0_i32_0 : i32, i32
  }
  func.func @transform_9(%arg0: i32) -> (i32, i32) {
    %c0_i32 = arith.constant 0 : i32
    %c0_i32_0 = arith.constant 0 : i32
    %c0_i32_1 = arith.constant 0 : i32
    return %c0_i32, %c0_i32_0 : i32, i32
  }
  func.func @transform_10(%arg0: i32) -> (i32, i32) {
    %c0_i32 = arith.constant 0 : i32
    %c0_i32_0 = arith.constant 0 : i32
    %c0_i32_1 = arith.constant 0 : i32
    return %c0_i32, %c0_i32_0 : i32, i32
  }
}

</mosaic_0001>

<bundles_post_ra>
// kernel: tpu_custom_call.1
= control target key start
LH: loop header
LB: loop body
LE: loop exit
PB: predicated region body
PF: predicated region fallthrough
CT: control target
= control target key end

     0   :  { %v1022_v3 = vmov 0.0|0.0   ;;  %vm1023_vm0 = vmmov 0   ;;  %v1024_v6 = vmov 0.0   ;;  %s1364_s0 = inlined_call_operand.vmem [shape: f32[8,128], index: 0, kind: input, shape index: {}]   ;;  %s1365_s1 = inlined_call_operand.vmem [shape: f32[8,128], index: 1, kind: input, shape index: {}]   ;;  %s1366_s2 = inlined_call_operand.vmem [shape: f32[128,128], index: 2, kind: input, shape index: {}]   ;;  %s1367_s3 = inlined_call_operand.vmem [shape: f32[1,128], index: 3, kind: input, shape index: {}]   ;;  %s1368_s4 = inlined_call_operand.vmem [shape: f32[128,64], index: 4, kind: input, shape index: {}]   ;;  %s1369_s5 = inlined_call_operand.vmem [shape: f32[1,64], index: 5, kind: input, shape index: {}]   ;;  %s1370_s6 = inlined_call_operand.vmem [shape: f32[128,128], index: 6, kind: input, shape index: {}]   ;;  %s1371_s7 = inlined_call_operand.vmem [shape: f32[1,128], index: 7, kind: input, shape index: {}]   ;;  %s1372_s8 = inlined_call_operand.vmem [shape: f32[128,64], index: 8, kind: input, shape index: {}]   ;;  %s1373_s9 = inlined_call_operand.vmem [shape: f32[1,64], index: 9, kind: input, shape index: {}]   ;;  %s1374_s10 = inlined_call_operand.hbm [shape: f32[1,128], index: 10, kind: output, shape index: {}]  }
   0x1   :  { %v37_v0 = vld [vmem:[%s1366_s2] sm:$0xff]  ;;  %v38_v1 = vld [vmem:[%s1366_s2 + $0x8] sm:$0xff]  ;;  %v39_v2 = vld [vmem:[%s1366_s2 + $0x10] sm:$0xff]  ;;  %870 = vmatprep.subr.bf16.mxu0 %v1022_v3  ;;  %757 = vmatprep.mubr.msk.f32.mxu0 %vm1023_vm0, %v1024_v6 }
   0x2   :  { %v871_v4 = vpack.c.bf16 %v38_v1, %v37_v0  ;;  %v40_v5 = vld [vmem:[%s1366_s2 + $0x18] sm:$0xff]  ;;  %894 = vmatprep.subr.bf16.mxu1 %v1022_v3  ;;  %792 = vmatprep.mubr.msk.f32.mxu1 %vm1023_vm0, %v1024_v6  ;;  %v41_v8 = vld [vmem:[%s1366_s2 + $0x20] sm:$0xff]  ;;  %v42_v9 = vld [vmem:[%s1366_s2 + $0x28] sm:$0xff] }
   0x3   :  { %v874_v7 = vpack.c.bf16 %v40_v5, %v39_v2  ;;  %v877_v10 = vpack.c.bf16 %v42_v9, %v41_v8  ;;  %v43_v11 = vld [vmem:[%s1366_s2 + $0x30] sm:$0xff]  ;;  %v44_v12 = vld [vmem:[%s1366_s2 + $0x38] sm:$0xff]  ;;  %v45_v14 = vld [vmem:[%s1366_s2 + $0x40] sm:$0xff] }
   0x4   :  { %872 = vmatpush3.bf16.msra.mxu0 %v871_v4  ;;  %v880_v13 = vpack.c.bf16 %v44_v12, %v43_v11  ;;  %v54_v15 = vld [vmem:[%s1368_s4] sm:$0xff]  ;;  %v55_v16 = vld [vmem:[%s1368_s4 + $0x8] sm:$0xff]  ;;  %v56_v19 = vld [vmem:[%s1368_s4 + $0x10] sm:$0xff] }
   0x5   :  { %873 = vmatprep.subr.bf16.mxu0 %v1022_v3  ;;  %v46_v17 = vld [vmem:[%s1366_s2 + $0x48] sm:$0xff]  ;;  %v895_v18 = vpack.c.bf16 %v55_v16, %v54_v15  ;;  %v57_v20 = vld [vmem:[%s1368_s4 + $0x18] sm:$0xff]  ;;  %v58_v23 = vld [vmem:[%s1368_s4 + $0x20] sm:$0xff] }
   0x6   :  { %v898_v21 = vpack.c.bf16 %v57_v20, %v56_v19  ;;  %v883_v22 = vpack.c.bf16 %v46_v17, %v45_v14  ;;  %v59_v24 = vld [vmem:[%s1368_s4 + $0x28] sm:$0xff] }
   0x7   :  { %896 = vmatpush3.bf16.msra.mxu1 %v895_v18 }
   0x8   :  { %875 = vmatpush3.bf16.msra.mxu0 %v874_v7  ;;  %897 = vmatprep.subr.bf16.mxu1 %v1022_v3 }
   0x9   :  { %876 = vmatprep.subr.bf16.mxu0 %v1022_v3 }
   0xc   :  { %878 = vmatpush3.bf16.msra.mxu0 %v877_v10 }
   0xd   :  { %879 = vmatprep.subr.bf16.mxu0 %v1022_v3 }
  0x10   :  { %881 = vmatpush3.bf16.msra.mxu0 %v880_v13 }
  0x11   :  { %15 = vsyncpa [#allocation3], 0  ;;  %882 = vmatprep.subr.bf16.mxu0 %v1022_v3  ;;  %v47_v25 = vld [vmem:[%s1366_s2 + $0x50] sm:$0xff]  ;;  %v48_v26 = vld [vmem:[%s1366_s2 + $0x58] sm:$0xff]  ;;  %899 = vmatpush3.bf16.msra.mxu1 %v898_v21  ;;  %v901_v27 = vpack.c.bf16 %v59_v24, %v58_v23  ;;  %vm225_vm1 = vcmask 523264   ;;  %vm526_vm6 = vcmask 64512  }
  0x12   :  { %v886_v28 = vpack.c.bf16 %v48_v26, %v47_v25  ;;  %900 = vmatprep.subr.bf16.mxu1 %v1022_v3  ;;  %v60_v29 = vld [vmem:[%s1368_s4 + $0x30] sm:$0xff]  ;;  %v61_v30 = vld [vmem:[%s1368_s4 + $0x38] sm:$0xff]  ;;  %v49_v31 = vld [vmem:[%s1366_s2 + $0x60] sm:$0xff]  ;;  %vm597_vm9 = vcmask 57344   ;;  %vm549_vm10 = vcmask 7168   ;;  %s1025_s17 = smov [#allocation2]  }
  0x13   :  { %v50_v32 = vld [vmem:[%s1366_s2 + $0x68] sm:$0xff]  ;;  %v904_v33 = vpack.c.bf16 %v61_v30, %v60_v29  ;;  %v62_v35 = vld [vmem:[%s1368_s4 + $0x40] sm:$0xff]  ;;  %v51_v37 = vld [vmem:[%s1366_s2 + $0x70] sm:$0xff]  ;;  %s639_s18 = sshll.u32 %s1025_s17, 4  ;;  %s640_s18 = int_to_ptr.vmem [resolvable:$true] %s639_s18 }
  0x14   :  { %884 = vmatpush3.bf16.msra.mxu0 %v883_v22  ;;  %v889_v34 = vpack.c.bf16 %v50_v32, %v49_v31  ;;  %v63_v36 = vld [vmem:[%s1368_s4 + $0x48] sm:$0xff]  ;;  %v52_v38 = vld [vmem:[%s1366_s2 + $0x78] sm:$0xff]  ;;  %v241_v41 = vld [vmem:[%s1370_s6] sm:$0xff]  ;;  %s1002_s19 = scalar_lea.vmem %s640_s18, 32  ;;  %p1003_p1 = scmp.lt.s32.totalorder %s640_s18, %s640_s18 }
  0x15   :  { %885 = vmatprep.subr.bf16.mxu0 %v1022_v3  ;;  %902 = vmatpush3.bf16.msra.mxu1 %v901_v27  ;;  %v907_v39 = vpack.c.bf16 %v63_v36, %v62_v35  ;;  %v892_v40 = vpack.c.bf16 %v52_v38, %v51_v37  ;;  %v242_v42 = vld [vmem:[%s1370_s6 + $0x8] sm:$0xff]  ;;  %v36_v43 = vld [vmem:[%s1364_s0] sm:$0xff]  ;;  %v243_v45 = vld [vmem:[%s1370_s6 + $0x10] sm:$0xff] }
  0x16   :  { %903 = vmatprep.subr.bf16.mxu1 %v1022_v3  ;;  %v919_v44 = vpack.c.bf16 %v242_v42, %v241_v41  ;;  %v244_v46 = vld [vmem:[%s1370_s6 + $0x18] sm:$0xff]  ;;  %v245_v48 = vld [vmem:[%s1370_s6 + $0x20] sm:$0xff]  ;;  %v246_v49 = vld [vmem:[%s1370_s6 + $0x28] sm:$0xff] }
  0x17   :  { %v922_v47 = vpack.c.bf16 %v244_v46, %v243_v45  ;;  %v925_v50 = vpack.c.bf16 %v246_v49, %v245_v48  ;;  %v247_v51 = vld [vmem:[%s1370_s6 + $0x30] sm:$0xff]  ;;  %v248_v52 = vld [vmem:[%s1370_s6 + $0x38] sm:$0xff]  ;;  %v249_v54 = vld [vmem:[%s1370_s6 + $0x40] sm:$0xff] }
  0x18   :  { %887 = vmatpush3.bf16.msra.mxu0 %v886_v28  ;;  %v928_v53 = vpack.c.bf16 %v248_v52, %v247_v51  ;;  %v250_v55 = vld [vmem:[%s1370_s6 + $0x48] sm:$0xff]  ;;  %v251_v57 = vld [vmem:[%s1370_s6 + $0x50] sm:$0xff]  ;;  %v252_v58 = vld [vmem:[%s1370_s6 + $0x58] sm:$0xff] }
  0x19   :  { %888 = vmatprep.subr.bf16.mxu0 %v1022_v3  ;;  %905 = vmatpush3.bf16.msra.mxu1 %v904_v33  ;;  %v931_v56 = vpack.c.bf16 %v250_v55, %v249_v54  ;;  %v934_v59 = vpack.c.bf16 %v252_v58, %v251_v57  ;;  %v253_v60 = vld [vmem:[%s1370_s6 + $0x60] sm:$0xff]  ;;  %v254_v61 = vld [vmem:[%s1370_s6 + $0x68] sm:$0xff]  ;;  %v255_v63 = vld [vmem:[%s1370_s6 + $0x70] sm:$0xff] }
  0x1a   :  { %906 = vmatprep.subr.bf16.mxu1 %v1022_v3  ;;  %v937_v62 = vpack.c.bf16 %v254_v61, %v253_v60  ;;  %v256_v0 = vld [vmem:[%s1370_s6 + $0x78] sm:$0xff]  ;;  %v240_v2 = vld [vmem:[%s1365_s1] sm:$0xff]  ;;  %v64_v4 = vld [vmem:[%s1368_s4 + $0x50] sm:$0xff]  ;;  %s998_s6 = scalar_lea.vmem %s640_s18, 16 }
  0x1b   :  { %v940_v1 = vpack.c.bf16 %v256_v0, %v255_v63  ;;  %v65_v5 = vld [vmem:[%s1368_s4 + $0x58] sm:$0xff]  ;;  %v66_v8 = vld [vmem:[%s1368_s4 + $0x60] sm:$0xff]  ;;  %v67_v9 = vld [vmem:[%s1368_s4 + $0x68] sm:$0xff]  ;;  %p999_p0 = scmp.ne.s32.totalorder %s640_s18, %s998_s6  ;;  %p1004_p2 = scmp.lt.s32.totalorder %s1002_s19, %s998_s6 }
  0x1c   :  { %890 = vmatpush3.bf16.msra.mxu0 %v889_v34  ;;  %v910_v7 = vpack.c.bf16 %v65_v5, %v64_v4  ;;  %v913_v10 = vpack.c.bf16 %v67_v9, %v66_v8  ;;  %v68_v11 = vld [vmem:[%s1368_s4 + $0x70] sm:$0xff]  ;;  %v69_v12 = vld [vmem:[%s1368_s4 + $0x78] sm:$0xff]  ;;  %v647_v14 = vld [vmem:[%s1367_s3] ss:$0 sm:$0xff] }
  0x1d   :  { %891 = vmatprep.subr.bf16.mxu0 %v1022_v3  ;;  %908 = vmatpush3.bf16.msra.mxu1 %v907_v39  ;;  %v916_v13 = vpack.c.bf16 %v69_v12, %v68_v11  ;;  %v258_v18 = vld [vmem:[%s1372_s8] sm:$0xff]  ;;  %v259_v19 = vld [vmem:[%s1372_s8 + $0x8] sm:$0xff]  ;;  %v260_v21 = vld [vmem:[%s1372_s8 + $0x10] sm:$0xff]  ;;  %p1005_p3 = por %p1004_p2, %p1003_p1 }
  0x1e   :  { %909 = vmatprep.subr.bf16.mxu1 %v1022_v3  ;;  %v943_v20 = vpack.c.bf16 %v259_v19, %v258_v18  ;;  %v261_v22 = vld [vmem:[%s1372_s8 + $0x18] sm:$0xff]  ;;  %v262_v25 = vld [vmem:[%s1372_s8 + $0x20] sm:$0xff]  ;;  %v263_v26 = vld [vmem:[%s1372_s8 + $0x28] sm:$0xff] }
  0x1f   :  { %v946_v24 = vpack.c.bf16 %v261_v22, %v260_v21  ;;  %v949_v27 = vpack.c.bf16 %v263_v26, %v262_v25  ;;  %v264_v28 = vld [vmem:[%s1372_s8 + $0x30] sm:$0xff]  ;;  %v265_v29 = vld [vmem:[%s1372_s8 + $0x38] sm:$0xff]  ;;  %v266_v31 = vld [vmem:[%s1372_s8 + $0x40] sm:$0xff]  ;;  %p1006_p4 = pnand %p1005_p3, %p999_p0 }
  0x20   :  { %893 = vmatpush3.bf16.msra.mxu0 %v892_v40  ;;  %v952_v30 = vpack.c.bf16 %v265_v29, %v264_v28  ;;  %v267_v32 = vld [vmem:[%s1372_s8 + $0x48] sm:$0xff]  ;;  %v268_v34 = vld [vmem:[%s1372_s8 + $0x50] sm:$0xff]  ;;  %v269_v35 = vld [vmem:[%s1372_s8 + $0x58] sm:$0xff] }
  0x21   :  { %918 = vmatprep.subr.bf16.mxu0 %v1022_v3  ;;  %911 = vmatpush3.bf16.msra.mxu1 %v910_v7  ;;  %v955_v33 = vpack.c.bf16 %v267_v32, %v266_v31  ;;  %v649_v36 = vld [vmem:[%s1371_s7] ss:$0 sm:$0xff]  ;;  %v958_v37 = vpack.c.bf16 %v269_v35, %v268_v34  ;;  %v271_v40 = vld [vmem:[%s1372_s8 + $0x68] sm:$0xff]  ;;  %v273_v45 = vld [vmem:[%s1372_s8 + $0x78] sm:$0xff] }
  0x22   :  { %912 = vmatprep.subr.bf16.mxu1 %v1022_v3  ;;  %v270_v39 = vld [vmem:[%s1372_s8 + $0x60] sm:$0xff] }
  0x23   :  { %758 = vmatmul.mubr.f32.vlgmr.msra.gmra.mrb[0].mxu0 %v36_v43  ;;  %v961_v43 = vpack.c.bf16 %v271_v40, %v270_v39  ;;  %v650_v51 = vld [vmem:[%s1373_s9] ss:$0 sm:$0xff] }
  0x24   :  { %920 = vmatpush3.bf16.msra.mxu0 %v919_v44  ;;  %827 = vmatprep.mubr.msk.f32.mxu0 %vm1023_vm0, %v1024_v6  ;;  %v272_v44 = vld [vmem:[%s1372_s8 + $0x70] sm:$0xff] }
  0x25   :  { %921 = vmatprep.subr.bf16.mxu0 %v1022_v3  ;;  %914 = vmatpush3.bf16.msra.mxu1 %v913_v10  ;;  %v964_v46 = vpack.c.bf16 %v273_v45, %v272_v44 }
  0x26   :  { %915 = vmatprep.subr.bf16.mxu1 %v1022_v3 }
  0x28   :  { %923 = vmatpush3.bf16.msra.mxu0 %v922_v47 }
  0x29   :  { %924 = vmatprep.subr.bf16.mxu0 %v1022_v3  ;;  %917 = vmatpush3.bf16.msra.mxu1 %v916_v13 }
  0x2a   :  { %942 = vmatprep.subr.bf16.mxu1 %v1022_v3 }
  0x2c   :  { %926 = vmatpush3.bf16.msra.mxu0 %v925_v50  ;;  %v648_v50 = vld [vmem:[%s1369_s5] ss:$0 sm:$0xff] }
  0x2d   :  { %927 = vmatprep.subr.bf16.mxu0 %v1022_v3 }
  0x30   :  { %929 = vmatpush3.bf16.msra.mxu0 %v928_v53 }
  0x31   :  { %930 = vmatprep.subr.bf16.mxu0 %v1022_v3 }
  0x34   :  { %932 = vmatpush3.bf16.msra.mxu0 %v931_v56 }
  0x35   :  { %933 = vmatprep.subr.bf16.mxu0 %v1022_v3 }
  0x38   :  { %935 = vmatpush3.bf16.msra.mxu0 %v934_v59 }
  0x39   :  { %936 = vmatprep.subr.bf16.mxu0 %v1022_v3 }
  0x3c   :  { %938 = vmatpush3.bf16.msra.mxu0 %v937_v62 }
  0x3d   :  { %939 = vmatprep.subr.bf16.mxu0 %v1022_v3 }
  0x40   :  { %941 = vmatpush3.bf16.msra.mxu0 %v940_v1 }
  0x41   :  { %865 = vmatprep.subr.mxu0 %v1024_v6 }
  0x43   :  { %828 = vmatmul.mubr.f32.vlgmr.msra.gmra.mrb[2].mxu0 %v240_v2 }
  0x44   :  { %867 = vmatprep.mubr.msk.f32.mxu0 %vm1023_vm0, %v1024_v6 }
  0xf6   :  { %v143_v15 = vpop.f32.mrb[0].mxu0 }
  0xf7   :  { %v144_v16 = vadd.f32 %v647_v14, %v143_v15  ;;  %v759_v17 = vpop.f32.mrb[1].mxu0  ;;  %v520_v15 = vlaneseq }
  0xf9   :  { %978 = vtanh.f32 %v144_v16  ;;  %v521_v16 = vshrl.u32 %v520_v15, 7  ;;  %v1338_v17 = vand.u32 127, %v520_v15 }
  0xfb   :  { %vm524_vm7 = vcmp.eq.s32.totalorder %v521_v16, %v1338_v17  ;;  %vm629_vm12 = vcmp.eq.s32.totalorder %v1338_v17, 1  ;;  %vm628_vm13 = vcmp.eq.s32.totalorder %v1338_v17, 0 }
 0x103   :  { %v979_v23 = vpop.eup %978 }
 0x104   :  { %793 = vmatmul.mubr.f32.vlgmr.msra.gmra.mrb[0].mxu1 %v979_v23 }
 0x105   :  { %944 = vmatpush3.bf16.msra.mxu1 %v943_v20  ;;  %862 = vmatprep.mubr.msk.f32.mxu1 %vm1023_vm0, %v1024_v6 }
 0x106   :  { %945 = vmatprep.subr.bf16.mxu1 %v1022_v3 }
 0x109   :  { %947 = vmatpush3.bf16.msra.mxu1 %v946_v24 }
 0x10a   :  { %948 = vmatprep.subr.bf16.mxu1 %v1022_v3 }
 0x10d   :  { %950 = vmatpush3.bf16.msra.mxu1 %v949_v27 }
 0x10e   :  { %951 = vmatprep.subr.bf16.mxu1 %v1022_v3 }
 0x111   :  { %953 = vmatpush3.bf16.msra.mxu1 %v952_v30 }
 0x112   :  { %954 = vmatprep.subr.bf16.mxu1 %v1022_v3 }
 0x115   :  { %956 = vmatpush3.bf16.msra.mxu1 %v955_v33 }
 0x116   :  { %v347_v38 = vpop.f32.mrb[2].mxu0  ;;  %957 = vmatprep.subr.bf16.mxu1 %v1022_v3 }
 0x117   :  { %v348_v41 = vadd.f32 %v649_v36, %v347_v38  ;;  %v829_v42 = vpop.f32.mrb[3].mxu0 }
 0x119   :  { %980 = vtanh.f32 %v348_v41  ;;  %959 = vmatpush3.bf16.msra.mxu1 %v958_v37 }
 0x11a   :  { %960 = vmatprep.subr.bf16.mxu1 %v1022_v3 }
 0x11d   :  { %962 = vmatpush3.bf16.msra.mxu1 %v961_v43 }
 0x11e   :  { %963 = vmatprep.subr.bf16.mxu1 %v1022_v3 }
 0x121   :  { %965 = vmatpush3.bf16.msra.mxu1 %v964_v46 }
 0x123   :  { %v981_v47 = vpop.eup %980 }
 0x124   :  { %863 = vmatmul.mubr.f32.vlgmr.msra.gmra.mrb[2].mxu1 %v981_v47 }
 0x1d7   :  { %v220_v48 = vpop.f32.mrb[0].mxu1 }
 0x1d8   :  { %v794_v49 = vpop.f32.mrb[1].mxu1  ;;  %v221_v53 = vadd.f32 %v648_v50, %v220_v48 }
 0x1da   :  { %v224_v57 = vmul.f32 %v221_v53, %v221_v53 }
 0x1dc   :  { %v226_v58 = vsel %vm225_vm1, %v224_v57, 0.0 }
 0x1f7   :  { %v424_v52 = vpop.f32.mrb[2].mxu1 }
 0x1f8   :  { %v425_v54 = vadd.f32 %v650_v51, %v424_v52  ;;  %v864_v55 = vpop.f32.mrb[3].mxu1 }
 0x1fa   :  { %v428_v56 = vmul.f32 %v425_v54, %v425_v54 }
 0x1fc   :  { %v429_v3 = vsel %vm225_vm1, %v428_v56, 0.0 }
 0x1fd   :  { %430 = vadd.xlane.f32.xlu0 %v429_v3 }
 0x201   :  { %227 = vadd.xlane.f32.xlu0 %v226_v58 }
 0x28a   :  { %v431_v59 = vpop.xlane.xlu0 %430 }
 0x28b   :  { %982 = vrsqrt.f32 %v431_v59  ;;  %vm434_vm2 = vcmp.eq.f32.partialorder %v431_v59, inf  ;;  %v437_v63 = vand.u32 2147483648, %v431_v59  ;;  %vm436_vm3 = vcmp.eq.f32.partialorder %v431_v59, 0.0 }
 0x28e   :  { %v228_v60 = vpop.xlane.xlu0 %227 }
 0x28f   :  { %984 = vrsqrt.f32 %v228_v60  ;;  %vm231_vm4 = vcmp.eq.f32.partialorder %v228_v60, inf  ;;  %v234_v7 = vand.u32 2147483648, %v228_v60  ;;  %vm233_vm5 = vcmp.eq.f32.partialorder %v228_v60, 0.0 }
 0x295   :  { %v983_v61 = vpop.eup %982 }
 0x296   :  { %v433_v62 = vmul.f32 %v983_v61, %v431_v59 }
 0x298   :  { %v435_v0 = vsel %vm434_vm2, %v431_v59, %v433_v62 }
 0x299   :  { %v985_v1 = vpop.eup %984  ;;  %v438_v2 = vsel %vm436_vm3, %v437_v63, %v435_v0 }
 0x29a   :  { %v439_v4 = vmax.f32 %v438_v2, 1e-12  ;;  %v230_v5 = vmul.f32 %v985_v1, %v228_v60 }
 0x29c   :  { %986 = vrcp.f32 %v439_v4  ;;  %v232_v8 = vsel %vm231_vm4, %v228_v60, %v230_v5 }
 0x29d   :  { %v235_v9 = vsel %vm233_vm5, %v234_v7, %v232_v8 }
 0x29e   :  { %v236_v10 = vmax.f32 %v235_v9, 1e-12 }
 0x2a0   :  { %988 = vrcp.f32 %v236_v10 }
 0x2a6   :  { %v987_v11 = vpop.eup %986 }
 0x2a7   :  { %v442_v12 = vmul.f32 %v987_v11, %v425_v54 }
 0x2a9   :  { %866 = vmatpush3.xpose.msk.msra.mxu0 %vm225_vm1, %v442_v12 }
 0x2aa   :  { %v989_v13 = vpop.eup %988 }
 0x2ab   :  { %v239_v14 = vmul.f32 %v989_v13, %v221_v53 }
 0x2ad   :  { %868 = vmatmul.mubr.msk.f32.vlgmr.msra.gmra.mrb[4].mxu0 %vm225_vm1, %v239_v14 }
 0x380   :  { %v515_v18 = vpop.f32.mrb[4].mxu0 }
 0x381   :  { %v519_v19 = vmul.f32 10.0, %v515_v18  ;;  %v869_v20 = vpop.f32.mrb[5].mxu0 }
 0x383   :  { %v536_v21 = vsel %vm526_vm6, %v519_v19, -inf  ;;  %v525_v22 = vsel %vm524_vm7, %v519_v19, 0.0 }
 0x384   :  { %537 = vmax.xlane.f32.xlu1 %v536_v21  ;;  %v577_v23 = vrot.slane %v536_v21, 4  ;;  %v527_v24 = vsel %vm526_vm6, %v525_v22, 0.0 }
 0x385   :  { %528 = vadd.xlane.f32.xlu0 %v527_v24  ;;  %v530_v25 = vrot.slane %v527_v24, 4 }
 0x386   :  { %v578_v26 = vmax.f32 %v536_v21, %v577_v23 }
 0x387   :  { %v531_v27 = vadd.f32 %v530_v25, %v527_v24 }
 0x388   :  { %v579_v28 = vrot.slane %v578_v26, 2 }
 0x389   :  { %v532_v29 = vrot.slane %v531_v27, 2 }
 0x38a   :  { %v580_v30 = vmax.f32 %v578_v26, %v579_v28 }
 0x38b   :  { %v533_v31 = vadd.f32 %v532_v29, %v531_v27 }
 0x38c   :  { %v581_v32 = vrot.slane %v580_v30, 1 }
 0x38d   :  { %v534_v33 = vrot.slane %v533_v31, 1 }
 0x38e   :  { %v582_v34 = vmax.f32 %v580_v30, %v581_v32 }
 0x38f   :  { %v535_v35 = vadd.f32 %v534_v33, %v533_v31 }
 0x390   :  { %v583_v36 = vsub.f32 %v519_v19, %v582_v34 }
 0x391   :  { %vm609_vm8 = vcmp.ge.f32.partialorder %v535_v35, %v582_v34 }
 0x392   :  { %v584_v37 = vmul.f32 1.442695, %v583_v36  ;;  %v654_v3 = vsel %vm609_vm8, 1.0, %v1024_v6 }
 0x393   :  { %v612_v57 = vsel %vm597_vm9, %v654_v3, 0.0 }
 0x394   :  { %990 = vpow2.f32 %v584_v37 }
 0x39e   :  { %v991_v38 = vpop.eup %990 }
 0x39f   :  { %v586_v39 = vsel %vm526_vm6, %v991_v38, 0.0 }
 0x3a0   :  { %v587_v40 = vrot.slane %v586_v39, 4 }
 0x3a2   :  { %v588_v41 = vadd.f32 %v587_v40, %v586_v39 }
 0x3a4   :  { %v589_v42 = vrot.slane %v588_v41, 2 }
 0x3a6   :  { %v590_v43 = vadd.f32 %v589_v42, %v588_v41 }
 0x3a8   :  { %v591_v44 = vrot.slane %v590_v43, 1 }
 0x3aa   :  { %v592_v45 = vadd.f32 %v591_v44, %v590_v43 }
 0x3ac   :  { %992 = vlog2.f32 %v592_v45 }
 0x3b6   :  { %v993_v46 = vpop.eup %992 }
 0x3b7   :  { %v594_v47 = vmul.f32 0.6931472, %v993_v46 }
 0x3b9   :  { %v595_v48 = vadd.f32 %v594_v47, %v582_v34 }
 0x3bb   :  { %v596_v49 = vsub.f32 %v595_v48, %v535_v35 }
 0x3bd   :  { %v598_v50 = vsel %vm597_vm9, %v596_v49, 0.0 }
 0x411   :  { %v538_v51 = vpop.xlane.xlu1 %537 }
 0x412   :  { %v539_v52 = vsub.f32 %v519_v19, %v538_v51  ;;  %v529_v53 = vpop.xlane.xlu0 %528 }
 0x413   :  { %vm561_vm11 = vcmp.ge.f32.partialorder %v529_v53, %v538_v51 }
 0x414   :  { %v540_v54 = vmul.f32 1.442695, %v539_v52  ;;  %v653_v55 = vsel %vm561_vm11, 1.0, %v1024_v6 }
 0x415   :  { %v564_v56 = vsel %vm549_vm10, %v653_v55, 0.0 }
 0x416   :  { %994 = vpow2.f32 %v540_v54  ;;  %565 = vadd.xlane.f32.xlu0 %v564_v56 }
 0x41a   :  { %613 = vadd.xlane.f32.xlu0 %v612_v57 }
 0x420   :  { %v995_v58 = vpop.eup %994 }
 0x421   :  { %v542_v59 = vsel %vm526_vm6, %v995_v58, 0.0 }
 0x422   :  { %543 = vadd.xlane.f32.xlu1 %v542_v59 }
 0x4a3   :  { %v566_v2 = vpop.xlane.xlu0 %565 }
 0x4a4   :  { %v567_v4 = vrot.slane %v566_v2, 4 }
 0x4a6   :  { %v568_v6 = vadd.f32 %v567_v4, %v566_v2 }
 0x4a7   :  { %v614_v5 = vpop.xlane.xlu0 %613 }
 0x4a8   :  { %v615_v7 = vrot.slane %v614_v5, 4  ;;  %v569_v8 = vrot.slane %v568_v6, 2 }
 0x4aa   :  { %v616_v9 = vadd.f32 %v615_v7, %v614_v5  ;;  %v570_v15 = vadd.f32 %v569_v8, %v568_v6 }
 0x4ac   :  { %v617_v13 = vrot.slane %v616_v9, 2  ;;  %v571_v22 = vrot.slane %v570_v15, 1 }
 0x4ae   :  { %v618_v21 = vadd.f32 %v617_v13, %v616_v9  ;;  %v572_v27 = vadd.f32 %v571_v22, %v570_v15 }
 0x4af   :  { %v544_v60 = vpop.xlane.xlu1 %543 }
 0x4b0   :  { %996 = vlog2.f32 %v544_v60  ;;  %v619_v28 = vrot.slane %v618_v21, 1 }
 0x4b2   :  { %v620_v31 = vadd.f32 %v619_v28, %v618_v21 }
 0x4ba   :  { %v997_v61 = vpop.eup %996 }
 0x4bb   :  { %v546_v62 = vmul.f32 0.6931472, %v997_v61 }
 0x4bd   :  { %v547_v63 = vadd.f32 %v546_v62, %v538_v51 }
 0x4bf   :  { %v548_v0 = vsub.f32 %v547_v63, %v529_v53 }
 0x4c1   :  { %v550_v1 = vsel %vm549_vm10, %v548_v0, 0.0 }
 0x4c2   :  { %551 = vadd.xlane.f32.xlu1 %v550_v1 }
 0x4c6   :  { %599 = vadd.xlane.f32.xlu1 %v598_v50 }
 0x54f   :  { %v552_v10 = vpop.xlane.xlu1 %551 }
 0x550   :  { %v553_v11 = vrot.slane %v552_v10, 4 }
 0x552   :  { %v554_v12 = vadd.f32 %v553_v11, %v552_v10 }
 0x553   :  { %v600_v14 = vpop.xlane.xlu1 %599 }
 0x554   :  { %v555_v16 = vrot.slane %v554_v12, 2  ;;  %v601_v18 = vrot.slane %v600_v14, 4 }
 0x556   :  { %v602_v19 = vadd.f32 %v601_v18, %v600_v14  ;;  %v556_v20 = vadd.f32 %v555_v16, %v554_v12 }
 0x558   :  { %v603_v23 = vrot.slane %v602_v19, 2  ;;  %v557_v24 = vrot.slane %v556_v20, 1 }
 0x55a   :  { %v604_v25 = vadd.f32 %v603_v23, %v602_v19  ;;  %v558_v26 = vadd.f32 %v557_v24, %v556_v20 }
 0x55c   :  { %966 = vpush %v558_v26  ;;  %v605_v29 = vrot.slane %v604_v25, 1 }
 0x55d   :  { %968 = vpush %v572_v27 }
 0x55e   :  { %v606_v30 = vadd.f32 %v605_v29, %v604_v25 }
 0x560   :  { %970 = vpush %v606_v30 }
 0x561   :  { %972 = vpush %v620_v31 }
 0x58d   :  { %s967_s5 = spop %966 }
 0x58e   :  { %s969_s8 = spop %968  ;;  %v560_v35 = vstv %s967_s5 }
 0x58f   :  { %v574_v32 = vstv %s969_s8 }
 0x590   :  { %v576_v36 = vmul.f32 0.125, %v574_v32 }
 0x591   :  { %s971_s9 = spop %970 }
 0x592   :  { %v608_v33 = vstv %s971_s9  ;;  %s973_s16 = spop %972 }
 0x593   :  { %v622_v34 = vstv %s973_s16  ;;  %v624_v38 = vadd.f32 %v608_v33, %v560_v35 }
 0x594   :  { %v623_v37 = vmul.f32 0.125, %v622_v34 }
 0x595   :  { %v625_v41 = vmul.f32 0.5, %v624_v38 }
 0x596   :  { %v626_v39 = vadd.f32 %v623_v37, %v576_v36 }
 0x598   :  { %v627_v40 = vmul.f32 0.5, %v626_v39 }
 0x59a   :  { %v630_v42 = vsel %vm629_vm12, %v627_v40, 0.0 }
 0x59b   :  { %v631_v43 = vsel %vm628_vm13, %v625_v41, %v630_v42 }
 0x59c   :  { %632 = vst [vmem:[#allocation2] sm:$0x1] %v631_v43 }
 0x59d   :  { %1009 = shalt.err (!%p1006_p4)
}
 0x59e   :  { %s1010_s1 = scalar_lea.hbm %s1374_s10, 16 }
 0x59f   :  { %p1011_p5 = scmp.ne.s32.totalorder %s1374_s10, %s1010_s1  ;;  %p1014_p6 = scmp.lt.u32.totalorder %s1010_s1, %s1374_s10 }
 0x5a1   :  { %p1016_p7 = pnand %p1014_p6, %p1011_p5 }
 0x5a3   :  { %1019 = shalt.err (!%p1016_p7)
}
 0x5a4   :  { %642 = dma.vmem_to_hbm [thread:$0]  %s640_s18, 16, %s1374_s10, [#allocation3]  }
 0x5a5   :  { %1020 = dma.done.wait [#allocation3], 16  }
 0x5a6   :  { %1021 = vsyncadd [#allocation3], 4294967280 }
 0x5a7   :  { %646 = vsyncpa [#allocation3], 1 }

</bundles_post_ra>
